<compile_context>
chip_gen: v7x
topology: tpu7x:2x2x1
jax: 0.10.0
libtpu: 0.0.40
codegen_flags: <defaults>
</compile_context>

<pallas_src>
import functools

import jax
import jax.numpy as jnp
from jax.experimental import pallas as pl
from jax.experimental.pallas import tpu as pltpu


def _matmul_bias_kernel(x_ref, w_ref, b_ref, o_ref):
    # One (tm, K) bf16 x-tile against the resident (K, Np) bf16 weight:
    # f32 accumulation on the MXU, f32 bias add on the VPU, cast on store.
    acc = jnp.dot(x_ref[...], w_ref[...], preferred_element_type=jnp.float32)
    o_ref[...] = (acc + b_ref[...]).astype(o_ref.dtype)


def _round_up(v, m):
    return ((v + m - 1) // m) * m


def _vmem_capacity_bytes():
    """Generation-aware VMEM capacity (128 MiB on v5e/v6e, 64 MiB/core on v7x)."""
    try:
        cap = int(pltpu.get_tpu_info().vmem_capacity_bytes)
    except Exception:
        cap = 64 * 1024 * 1024  # conservative fallback (v7x per-core VMEM)
    return max(32 * 1024 * 1024, min(cap, 128 * 1024 * 1024))


def _choose_tm(M, K, Np, x_itemsize, out_itemsize, budget_bytes):
    """Largest row tile (<= 2048) whose working set fits the VMEM budget.

    Counts the double-buffered bf16 x tile, the (still double-buffered)
    resident bf16 weight, the f32 bias, the double-buffered f32 output tile
    and one f32 accumulator temp explicitly (per review: don't size everything
    with x.itemsize).
    """
    sub = 16  # sublane multiple covering f32 (8) and bf16/f16 (16) tiles
    tm = 2048
    while tm > sub:
        need = (2 * tm * K * x_itemsize        # streamed x tile (2 bufs)
                + 2 * K * Np * x_itemsize      # resident weight (2 bufs)
                + 2 * Np * 4                   # resident f32 bias (2 bufs)
                + 2 * tm * Np * out_itemsize   # output tile (2 bufs)
                + tm * Np * 4)                 # f32 matmul accumulator temp
        if need <= budget_bytes:
            break
        tm //= 2
    tm = max(tm, sub)
    # Never bigger than the (sublane-aligned) problem.
    tm = min(tm, _round_up(M, sub))
    # v7x megacore: make sure the "parallel" M axis has >= 2 grid steps when M
    # is large enough, so both TensorCores get work (no-op on v5e/v6e).
    if M > 2 * sub and pl.cdiv(M, tm) < 2:
        tm = _round_up(pl.cdiv(M, 2), sub)
    return tm


def patch_embeddings_transpose(x, weight, bias, *, patch_size, d):
    """Equivalent of PatchEmbeddings_transpose.forward.

    x:      (B, d*d, hidden_dim)              -- "b (h w) c"
    weight: (hidden_dim, channels, p, p)      -- PyTorch ConvTranspose2d layout
    bias:   (channels,)
    returns (B, channels, d*p, d*p)           -- NCHW, matching PyTorch
    """
    B, S, K = x.shape
    assert S == d * d, "sequence length must equal d*d"
    Cin, Cout, p, p2 = weight.shape
    assert Cin == K and p == patch_size and p2 == patch_size

    M = B * S
    N = Cout * p * p
    out_dtype = jnp.promote_types(x.dtype, weight.dtype)

    # bf16 operands for the MXU (f32 accumulation keeps accuracy).
    compute_dtype = (jnp.bfloat16 if jnp.dtype(x.dtype) == jnp.dtype(jnp.float32)
                     else x.dtype)

    x2 = x.reshape(M, K).astype(compute_dtype)
    w2 = weight.reshape(K, N).astype(compute_dtype)       # (hidden, Cout*p*p)
    b2 = jnp.repeat(bias.astype(jnp.float32), p * p).reshape(1, N)

    # --- Lane-dense N: pad output columns up to a multiple of 128 (zero weight
    # + zero bias -> pad columns are exactly 0 and sliced off afterwards). ----
    Np = max(128, _round_up(N, 128))
    if Np != N:
        w2 = jnp.pad(w2, ((0, 0), (0, Np - N)))
        b2 = jnp.pad(b2, ((0, 0), (0, Np - N)))

    x_isz = jnp.dtype(compute_dtype).itemsize
    o_isz = jnp.dtype(out_dtype).itemsize

    vmem_cap = _vmem_capacity_bytes()
    budget = int(vmem_cap * 0.6)                 # leave headroom for Mosaic scratch
    tm = _choose_tm(M, K, Np, x_isz, o_isz, budget)

    # No jnp.pad along M: Pallas clips the ragged last block (masked writeback);
    # garbage rows in the last input block only produce clipped output rows.
    grid = (pl.cdiv(M, tm),)

    cost = pl.CostEstimate(
        flops=2 * M * K * Np,
        transcendentals=0,
        bytes_accessed=M * K * x_isz + K * Np * x_isz + Np * 4 + M * Np * o_isz,
    )

    out2 = pl.pallas_call(
        _matmul_bias_kernel,
        out_shape=jax.ShapeDtypeStruct((M, Np), out_dtype),
        grid_spec=pltpu.PrefetchScalarGridSpec(
            num_scalar_prefetch=0,
            grid=grid,
            in_specs=[
                pl.BlockSpec((tm, K), lambda i: (i, 0)),    # x tile (streamed)
                pl.BlockSpec((K, Np), lambda i: (0, 0)),    # weight (resident)
                pl.BlockSpec((1, Np), lambda i: (0, 0)),    # bias   (resident)
            ],
            out_specs=pl.BlockSpec((tm, Np), lambda i: (i, 0)),
        ),
        compiler_params=pltpu.CompilerParams(
            dimension_semantics=("parallel",),              # shards M over TCs (v7x)
            vmem_limit_bytes=int(min(vmem_cap * 0.9, vmem_cap - (4 << 20))),
        ),
        cost_estimate=cost,
    )(x2, w2, b2)

    # Drop N padding; out2[(b,i,j), (co,ki,kj)] -> out[b, co, i*p+ki, j*p+kj].
    out2 = out2[:, :N]
    out = out2.reshape(B, d, d, Cout, p, p)
    out = out.transpose(0, 3, 1, 4, 2, 5).reshape(B, Cout, d * p, d * p)
    return out


def _reference(x, weight, bias, *, patch_size, d):
    """Pure-JAX reference (same math as stride==kernel_size ConvTranspose2d)."""
    B, S, K = x.shape
    Cin, Cout, p, _ = weight.shape
    o = jnp.einsum("bsc,ckij->bskij", x, weight) + bias[None, None, :, None, None]
    o = o.reshape(B, d, d, Cout, p, p).transpose(0, 3, 1, 4, 2, 5)
    return o.reshape(B, Cout, d * p, d * p)


if __name__ == "__main__":
    # Small shapes consistent with the module:
    #   patch_size=4, hidden_dim=32, channels=3, d=4  =>  x: (2, 16, 32)
    B, d, p, hidden_dim, channels = 2, 4, 4, 32, 3

    key = jax.random.PRNGKey(0)
    kx, kw, kb = jax.random.split(key, 3)
    x = jax.random.normal(kx, (B, d * d, hidden_dim), dtype=jnp.float32)
    # Deterministic synthetic parameters (PyTorch ConvTranspose2d weight layout).
    weight = jax.random.normal(kw, (hidden_dim, channels, p, p), dtype=jnp.float32) * 0.05
    bias = jax.random.normal(kb, (channels,), dtype=jnp.float32) * 0.05

    fn = jax.jit(functools.partial(patch_embeddings_transpose, patch_size=p, d=d))
    out = jax.block_until_ready(fn(x, weight, bias))

    # The kernel computes with bf16 operands + f32 accumulation; compare against
    # the f32 reference evaluated on the same bf16-rounded operands.
    x_r = x.astype(jnp.bfloat16).astype(jnp.float32)
    w_r = weight.astype(jnp.bfloat16).astype(jnp.float32)
    ref = _reference(x_r, w_r, bias, patch_size=p, d=d)

    assert out.shape == (B, channels, d * p, d * p)
    assert jnp.allclose(out, ref, atol=1e-4, rtol=1e-4)

    print("KERNEL_OK")
</pallas_src>

<mosaic_0001>
module attributes {stable_mosaic.version = 11 : i64} {
  func.func @_matmul_bias_kernel(%arg0: i32, %arg1: memref<32x32xbf16, #tpu.memory_space<vmem>>, %arg2: memref<32x128xbf16, #tpu.memory_space<vmem>>, %arg3: memref<1x128xf32, #tpu.memory_space<vmem>>, %arg4: memref<32x128xf32, #tpu.memory_space<vmem>>) attributes {dimension_semantics = [#tpu.dimension_semantics<parallel>], iteration_bounds = array<i64: 1>, scalar_prefetch = 0 : i64, scratch_operands = 0 : i64, tpu.core_type = #tpu.core_type<tc>, window_params = [{transform_indices = @transform_0, window_bounds = array<i64: 32, 32>}, {pipeline_mode = #tpu.pipeline_mode<synchronous>, transform_indices = @transform_1, window_bounds = array<i64: 32, 128>}, {pipeline_mode = #tpu.pipeline_mode<synchronous>, transform_indices = @transform_2, window_bounds = array<i64: 1, 128>}, {transform_indices = @transform_3, window_bounds = array<i64: 32, 128>}]} {
    %c0 = arith.constant 0 : index
    %c0_0 = arith.constant 0 : index
    %0 = vector.load %arg1[%c0, %c0_0] : memref<32x32xbf16, #tpu.memory_space<vmem>>, vector<32x32xbf16>
    %c0_1 = arith.constant 0 : index
    %c0_2 = arith.constant 0 : index
    %1 = vector.load %arg2[%c0_1, %c0_2] : memref<32x128xbf16, #tpu.memory_space<vmem>>, vector<32x128xbf16>
    %cst = arith.constant dense<0.000000e+00> : vector<32x128xf32>
    %2 = tpu.matmul %0, %1, %cst {dimension_numbers = #tpu.dot_dimension_numbers<[1], [0], [0], [1], [0, 0, 1, 1], [], []>} : vector<32x32xbf16>, vector<32x128xbf16>, vector<32x128xf32> -> vector<32x128xf32>
    %c0_3 = arith.constant 0 : index
    %c0_4 = arith.constant 0 : index
    %3 = vector.load %arg3[%c0_3, %c0_4] : memref<1x128xf32, #tpu.memory_space<vmem>>, vector<1x128xf32>
    %4 = vector.broadcast %3 : vector<1x128xf32> to vector<32x128xf32>
    %5 = arith.addf %2, %4 : vector<32x128xf32>
    %c0_5 = arith.constant 0 : index
    %c0_6 = arith.constant 0 : index
    %6 = vector.load %arg4[%c0_5, %c0_6] : memref<32x128xf32, #tpu.memory_space<vmem>>, vector<32x128xf32>
    tpu.vector_store %arg4[%c0_5, %c0_6], %5 {strides = array<i32>} : memref<32x128xf32, #tpu.memory_space<vmem>>, vector<32x128xf32>,
    return
  }
  func.func @transform_0(%arg0: i32) -> (i32, i32) {
    %c0_i32 = arith.constant 0 : i32
    %c0_i32_0 = arith.constant 0 : i32
    return %arg0, %c0_i32 : i32, i32
  }
  func.func @transform_1(%arg0: i32) -> (i32, i32) {
    %c0_i32 = arith.constant 0 : i32
    %c0_i32_0 = arith.constant 0 : i32
    %c0_i32_1 = arith.constant 0 : i32
    return %c0_i32, %c0_i32_0 : i32, i32
  }
  func.func @transform_2(%arg0: i32) -> (i32, i32) {
    %c0_i32 = arith.constant 0 : i32
    %c0_i32_0 = arith.constant 0 : i32
    %c0_i32_1 = arith.constant 0 : i32
    return %c0_i32, %c0_i32_0 : i32, i32
  }
  func.func @transform_3(%arg0: i32) -> (i32, i32) {
    %c0_i32 = arith.constant 0 : i32
    %c0_i32_0 = arith.constant 0 : i32
    return %arg0, %c0_i32 : i32, i32
  }
}

</mosaic_0001>

<bundles_post_ra>
// kernel: patch_embeddings_transpose.1
= control target key start
LH: loop header
LB: loop body
LE: loop exit
PB: predicated region body
PF: predicated region fallthrough
CT: control target
= control target key end

     0   :  { %vm52_vm0 = vcmask 261120   ;;  %s186_s1 = inlined_call_operand.vmem [shape: bf16[32,128], index: 1, kind: input, shape index: {}]   ;;  %s187_s0 = inlined_call_operand.vmem [shape: bf16[32,32], index: 0, kind: input, shape index: {}]   ;;  %s188_s2 = inlined_call_operand.vmem [shape: f32[1,128], index: 2, kind: input, shape index: {}]   ;;  %s189_s3 = inlined_call_operand.vmem [shape: f32[32,128], index: 3, kind: output, shape index: {}]  }
   0x1   :  { %v135_v0 = vld [vmem:[%s186_s1] sm:$0xff]   ;;  %v136_v1 = vld [vmem:[%s186_s1 + $0x8] sm:$0xff]  }
   0x2   :  { %127 = vmatprep.subr.bf16.mxu0 %v135_v0  ;;  %v137_v2 = vld [vmem:[%s187_s0] sm:$0xff]   ;;  %v138_v3 = vld [vmem:[%s187_s0 + $0x8] sm:$0xff]  }
   0x3   :  { %128 = vmatpush3.bf16.msra.mxu0 %v135_v0  ;;  %131 = vmatprep.mubr.msk.bf16.mxu0 %vm52_vm0, %v137_v2  ;;  %v116_v4 = vld [vmem:[%s188_s2] ss:$0 sm:$0xff] }
   0x4   :  { %129 = vmatprep.subr.bf16.mxu0 %v136_v1 }
   0x7   :  { %130 = vmatpush3.bf16.msra.mxu0 %v136_v1 }
   0xa   :  { %132 = vmatmul.mubr.msk.bf16.vlgmr.msra.gmra.mrb[0].mxu0 %vm52_vm0, %v138_v3 }
  0xdd   :  { %v133_v5 = vpop.f32.mrb[0].mxu0 }
  0xde   :  { %v102_v6 = vadd.f32 %v133_v5, %v116_v4  ;;  %v93_v7 = vpop.f32.mrb[1].mxu0 }
  0xdf   :  { %v94_v8 = vadd.f32 %v116_v4, %v93_v7  ;;  %v134_v9 = vpop.f32.mrb[2].mxu0 }
  0xe0   :  { %110 = vst [vmem:[%s189_s3 + $0x10] sm:$0xff] %v102_v6  ;;  %v105_v10 = vadd.f32 %v134_v9, %v116_v4  ;;  %v96_v11 = vpop.f32.mrb[3].mxu0 }
  0xe1   :  { %108 = vst [vmem:[%s189_s3] sm:$0xff] %v94_v8  ;;  %v97_v12 = vadd.f32 %v116_v4, %v96_v11 }
  0xe2   :  { %111 = vst [vmem:[%s189_s3 + $0x18] sm:$0xff] %v105_v10 }
  0xe3   :  { %109 = vst [vmem:[%s189_s3 + $0x8] sm:$0xff] %v97_v12 }

</bundles_post_ra>
